<compile_context>
chip_gen: v6e
topology: v6e:2x2x1
jax: 0.10.0
libtpu: 0.0.40
codegen_flags: <defaults>
</compile_context>

<pallas_src>
import jax
import jax.numpy as jnp
from jax.experimental import pallas as pl
from jax.experimental.pallas import tpu as pltpu

ATOM_DIMS = 8          # cfg.atom_dims
MAX_AA_TYPES = 22
TILE_N_DIST = 512      # distance kernel row tile
TILE_M_DIST = 1024     # distance kernel column tile
TILE_N_MP = 1024       # row tile for MP / MLP kernels (lane-dense slab)
NEG_SLOPE = 0.2
GN_EPS = 1e-5
BIG_DIST = 1e10        # emulates KeOps diagonal_ranges (cross-batch exclusion)


# ----------------------------------------------------------------------------
# small helpers
# ----------------------------------------------------------------------------
def _round_up(n, m):
    return ((n + m - 1) // m) * m


def _pad_axis(a, axis, target, value=0):
    n = a.shape[axis]
    if target == n:
        return a
    widths = [(0, 0)] * a.ndim
    widths[axis] = (0, target - n)
    return jnp.pad(a, widths, constant_values=value)


def _pad_rows(a, target, value=0):
    return _pad_axis(a, 0, target, value)


def _choose_row_tile(N, max_tile):
    """Row tile: multiple of 8, <= max_tile, and at least 2 grid steps when
    N allows (v7x has 2 TensorCores; a 1-step parallel grid idles one)."""
    Np8 = _round_up(N, 8)
    t = min(max_tile, Np8)
    if Np8 > 8 and Np8 // t < 2:
        t = _round_up((Np8 + 1) // 2, 8)
    Np = _round_up(N, t)
    return t, Np


# ----------------------------------------------------------------------------
# Pallas kernels
# ----------------------------------------------------------------------------
def dist_kernel(x_ref, yT_ref, xb_ref, ybT_ref, out_ref):
    """Squared pairwise distances with batch masking.

    x_ref:  (TN, 3)   query coords
    yT_ref: (3, TM)   target coords, transposed (column tile)
    xb_ref: (TN, 1)   int32 batch ids of queries
    ybT_ref:(1, TM)   int32 batch ids of targets
    out:    (TN, TM)  squared distance (+BIG_DIST where batches differ)
    """
    acc = jnp.zeros(out_ref.shape, jnp.float32)
    for c in range(3):  # static unroll over xyz (exact formula, matches ref)
        diff = x_ref[:, c:c + 1] - yT_ref[c:c + 1, :]   # (TN,1)-(1,TM)->(TN,TM)
        acc = acc + diff * diff
    mask = xb_ref[...] != ybT_ref[...]
    out_ref[...] = acc + jnp.where(mask, BIG_DIST, 0.0).astype(jnp.float32)


def mlp2_res_kernel(x_ref, rt_ref, table_ref,
                    w1_ref, b1_ref, w2_ref, b2_ref, out_ref):
    """transform_types MLP (Linear -> LeakyReLU(0.2) -> Linear) fused with the
    res_embed lookup (done as a one-hot MXU matmul — no in-kernel gather)."""
    x = x_ref[...]
    h = jnp.dot(x, w1_ref[...], preferred_element_type=jnp.float32) + b1_ref[...]
    h = jnp.where(h >= 0, h, NEG_SLOPE * h)
    y = jnp.dot(h, w2_ref[...], preferred_element_type=jnp.float32) + b2_ref[...]
    n_types = table_ref.shape[0]
    rt = rt_ref[...]                                            # (TN, 1) int32
    onehot = (rt == jax.lax.broadcasted_iota(jnp.int32, (1, n_types), 1))
    y = y + jnp.dot(onehot.astype(jnp.float32), table_ref[...],
                    preferred_element_type=jnp.float32)
    out_ref[...] = y


def _mp_step_packed(pe, xpack, w_s_rep, b1_rep, w_nd, w2_stack, b2k, gamma, beta):
    """One message-passing layer on lane-dense packed operands.

    pe:      (TN, D)          "self" feature (also the residual base)
    xpack:   (TN, K*D + K)    [nbr_0 | nbr_1 | ... | nbr_{K-1} | dists]
    w_s_rep: (D, K*H)         w1s tiled K times along columns
    b1_rep:  (1, K*H)         b1 tiled K times
    w_nd:    (K*D+K, K*H)     block-diag(w1n) stacked on per-k w1d rows
    w2_stack:(K*H, D)         W2 stacked K times (folds the K-reduction)
    b2k:     (1, D)           K * b2
    out = pe + LeakyReLU(GroupNorm2(msg)),
    msg = (sum_k LeakyReLU([pe, nbr_k, d_k] @ W1 + b1)) @ W2 + K*b2.
    """
    D = pe.shape[-1]
    h = (jnp.dot(xpack, w_nd, preferred_element_type=jnp.float32)
         + jnp.dot(pe, w_s_rep, preferred_element_type=jnp.float32)
         + b1_rep)                                              # (TN, K*H)
    h = jnp.where(h >= 0, h, NEG_SLOPE * h)
    msg = jnp.dot(h, w2_stack, preferred_element_type=jnp.float32) + b2k  # (TN,D)

    # GroupNorm(num_groups=2, num_channels=D) via (1, D) group masks.
    half = D // 2
    col = jax.lax.broadcasted_iota(jnp.int32, (1, D), 1)
    m1 = (col < half).astype(jnp.float32)
    m2 = 1.0 - m1
    mean1 = jnp.sum(msg * m1, axis=-1, keepdims=True) / half
    mean2 = jnp.sum(msg * m2, axis=-1, keepdims=True) / half
    var1 = jnp.sum(((msg - mean1) ** 2) * m1, axis=-1, keepdims=True) / half
    var2 = jnp.sum(((msg - mean2) ** 2) * m2, axis=-1, keepdims=True) / half
    gn = (m1 * (msg - mean1) * jax.lax.rsqrt(var1 + GN_EPS)
          + m2 * (msg - mean2) * jax.lax.rsqrt(var2 + GN_EPS))
    gn = gn * gamma + beta
    return pe + jnp.where(gn >= 0, gn, NEG_SLOPE * gn)


def mp_kernel(self_ref, xpack_ref,
              wsrep_ref, b1rep_ref, wnd_ref, w2st_ref, b2k_ref,
              gamma_ref, beta_ref, out_ref):
    """One MP layer (Atom_Atom_embedding_MP: the neighbor gather changes every
    layer so layers cannot be fused)."""
    out_ref[...] = _mp_step_packed(
        self_ref[...], xpack_ref[...],
        wsrep_ref[...], b1rep_ref[...], wnd_ref[...], w2st_ref[...],
        b2k_ref[...], gamma_ref[...], beta_ref[...])


def embed_fused_kernel(xpack_ref,
                       wsrep_ref, b1rep_ref, wnd_ref, w2st_ref, b2k_ref,
                       gamma_ref, beta_ref, out_ref):
    """All 3 layers of Atom_embedding_MP fused: the packed neighbor slab is
    loaded once, pe (initialized to ones) never leaves VMEM."""
    TN, D = out_ref.shape
    n_layers = wsrep_ref.shape[0]
    xpack = xpack_ref[...]
    pe = jnp.ones((TN, D), jnp.float32)
    for l in range(n_layers):                                  # static unroll (3)
        pe = _mp_step_packed(pe, xpack,
                             wsrep_ref[l], b1rep_ref[l], wnd_ref[l],
                             w2st_ref[l], b2k_ref[l], gamma_ref[l], beta_ref[l])
    out_ref[...] = pe


# ----------------------------------------------------------------------------
# Host-side operand packing / weight expansion
# ----------------------------------------------------------------------------
def _pack_neighbors(nbr, dists, Np):
    """nbr (N,K,D), dists (N,K) -> lane-dense (Np, K*D + K) f32 slab.
    Only a free reshape + concat; no host transposes."""
    N, K, D = nbr.shape
    x = jnp.concatenate(
        [nbr.reshape(N, K * D).astype(jnp.float32), dists.astype(jnp.float32)],
        axis=-1)
    return _pad_rows(x, Np)


def _expand_layer(layer, D, K):
    """Expand a torch MP-layer's weights into the lane-dense matmul operands."""
    H = 2 * D + 1
    W1, b1, W2, b2 = layer["W1"], layer["b1"], layer["W2"], layer["b2"]
    w1s, w1n, w1d = W1[:D], W1[D:2 * D], W1[2 * D:2 * D + 1]
    eye = jnp.eye(K, dtype=jnp.float32)
    # block-diagonal replication of the neighbor part of W1
    w_nd_bd = jnp.einsum('ab,dh->adbh', eye, w1n).reshape(K * D, K * H)
    # per-k distance-scalar rows
    w_nd_dist = jnp.einsum('ab,xh->axbh', eye, w1d).reshape(K, K * H)
    w_nd = jnp.concatenate([w_nd_bd, w_nd_dist], axis=0)        # (K*D+K, K*H)
    w_s_rep = jnp.tile(w1s, (1, K))                             # (D, K*H)
    b1_rep = jnp.tile(b1, K)[None, :]                           # (1, K*H)
    w2_stack = jnp.tile(W2, (K, 1))                             # (K*H, D)
    b2k = (float(K) * b2)[None, :]                              # (1, D)
    return (w_s_rep, b1_rep, w_nd, w2_stack, b2k,
            layer["gamma"][None, :], layer["beta"][None, :])


def _expand_layers_stacked(layers, D, K):
    parts = [_expand_layer(lp, D, K) for lp in layers]
    return tuple(jnp.stack([p[i] for p in parts]) for i in range(7))


# ----------------------------------------------------------------------------
# Wrappers (padding + pallas_call plumbing)
# ----------------------------------------------------------------------------
def pallas_pairwise_dist(x, y, xb, yb, tile_n=TILE_N_DIST, tile_m=TILE_M_DIST):
    """Returns (N, M) squared distances; cross-batch entries get +BIG_DIST."""
    N, M = x.shape[0], y.shape[0]
    tile_n, Np = _choose_row_tile(N, tile_n)
    tile_m = min(tile_m, _round_up(M, 128))
    Mp = _round_up(M, tile_m)

    xp = _pad_rows(x.astype(jnp.float32), Np)
    xbp = _pad_rows(xb.astype(jnp.int32)[:, None], Np, value=-1)
    yp = _pad_rows(y.astype(jnp.float32), Mp)
    ybp = _pad_rows(yb.astype(jnp.int32)[:, None], Mp, value=-2)
    yT = yp.T                      # (3, Mp)
    ybT = ybp.T                    # (1, Mp)

    out = pl.pallas_call(
        dist_kernel,
        out_shape=jax.ShapeDtypeStruct((Np, Mp), jnp.float32),
        grid=(Np // tile_n, Mp // tile_m),
        in_specs=[
            pl.BlockSpec((tile_n, 3), lambda i, j: (i, 0)),
            pl.BlockSpec((3, tile_m), lambda i, j: (0, j)),
            pl.BlockSpec((tile_n, 1), lambda i, j: (i, 0)),
            pl.BlockSpec((1, tile_m), lambda i, j: (0, j)),
        ],
        out_specs=pl.BlockSpec((tile_n, tile_m), lambda i, j: (i, j)),
        compiler_params=pltpu.CompilerParams(
            dimension_semantics=("parallel", "parallel")),
    )(xp, yT, xbp, ybT)
    # slice padded columns off BEFORE top_k (correctness: no clamped gathers)
    return out[:N, :M]


def pallas_transform_types(atomtypes, restypes, res_table, tt, tile_n=TILE_N_MP):
    """transform_types MLP + res_embed add, fused into one kernel."""
    N = atomtypes.shape[0]
    tile_n, Np = _choose_row_tile(N, tile_n)
    xp = _pad_rows(atomtypes.astype(jnp.float32), Np)
    rp = _pad_rows(restypes.astype(jnp.int32)[:, None], Np)
    W1, b1, W2, b2 = tt["W1"], tt["b1"], tt["W2"], tt["b2"]
    Din, Dh = W1.shape
    Dout = W2.shape[1]
    T = res_table.shape[0]
    out = pl.pallas_call(
        mlp2_res_kernel,
        out_shape=jax.ShapeDtypeStruct((Np, Dout), jnp.float32),
        grid=(Np // tile_n,),
        in_specs=[
            pl.BlockSpec((tile_n, Din), lambda i: (i, 0)),
            pl.BlockSpec((tile_n, 1), lambda i: (i, 0)),
            pl.BlockSpec((T, Dout), lambda i: (0, 0)),
            pl.BlockSpec((Din, Dh), lambda i: (0, 0)),
            pl.BlockSpec((1, Dh), lambda i: (0, 0)),
            pl.BlockSpec((Dh, Dout), lambda i: (0, 0)),
            pl.BlockSpec((1, Dout), lambda i: (0, 0)),
        ],
        out_specs=pl.BlockSpec((tile_n, Dout), lambda i: (i, 0)),
        compiler_params=pltpu.CompilerParams(dimension_semantics=("parallel",)),
    )(xp, rp, res_table.astype(jnp.float32), W1, b1[None, :], W2, b2[None, :])
    return out[:N]


def pallas_mp_layer(self_feat, nbr, dists, layer, tile_n=TILE_N_MP):
    """One message-passing layer.  nbr: (N, K, D), dists: (N, K)."""
    N, D = self_feat.shape
    K = dists.shape[1]
    H = 2 * D + 1
    KH = K * H
    KDK = K * D + K
    tile_n, Np = _choose_row_tile(N, tile_n)

    sp = _pad_rows(self_feat.astype(jnp.float32), Np)
    xp = _pack_neighbors(nbr, dists, Np)
    wsrep, b1rep, wnd, w2st, b2k, gamma, beta = _expand_layer(layer, D, K)

    out = pl.pallas_call(
        mp_kernel,
        out_shape=jax.ShapeDtypeStruct((Np, D), jnp.float32),
        grid=(Np // tile_n,),
        in_specs=[
            pl.BlockSpec((tile_n, D), lambda i: (i, 0)),
            pl.BlockSpec((tile_n, KDK), lambda i: (i, 0)),
            pl.BlockSpec((D, KH), lambda i: (0, 0)),
            pl.BlockSpec((1, KH), lambda i: (0, 0)),
            pl.BlockSpec((KDK, KH), lambda i: (0, 0)),
            pl.BlockSpec((KH, D), lambda i: (0, 0)),
            pl.BlockSpec((1, D), lambda i: (0, 0)),
            pl.BlockSpec((1, D), lambda i: (0, 0)),
            pl.BlockSpec((1, D), lambda i: (0, 0)),
        ],
        out_specs=pl.BlockSpec((tile_n, D), lambda i: (i, 0)),
        compiler_params=pltpu.CompilerParams(dimension_semantics=("parallel",)),
    )(sp, xp, wsrep, b1rep, wnd, w2st, b2k, gamma, beta)
    return out[:N]


def pallas_embed_fused(nbr, dists, layers, tile_n=TILE_N_MP):
    """All 3 Atom_embedding_MP layers in one pallas_call (nbr/dists shared)."""
    N, K, D = nbr.shape
    H = 2 * D + 1
    KH = K * H
    KDK = K * D + K
    L = len(layers)
    tile_n, Np = _choose_row_tile(N, tile_n)

    xp = _pack_neighbors(nbr, dists, Np)
    wsrep, b1rep, wnd, w2st, b2k, gamma, beta = _expand_layers_stacked(layers, D, K)

    full3 = lambda i: (0, 0, 0)
    out = pl.pallas_call(
        embed_fused_kernel,
        out_shape=jax.ShapeDtypeStruct((Np, D), jnp.float32),
        grid=(Np // tile_n,),
        in_specs=[
            pl.BlockSpec((tile_n, KDK), lambda i: (i, 0)),
            pl.BlockSpec((L, D, KH), full3),
            pl.BlockSpec((L, 1, KH), full3),
            pl.BlockSpec((L, KDK, KH), full3),
            pl.BlockSpec((L, KH, D), full3),
            pl.BlockSpec((L, 1, D), full3),
            pl.BlockSpec((L, 1, D), full3),
            pl.BlockSpec((L, 1, D), full3),
        ],
        out_specs=pl.BlockSpec((tile_n, D), lambda i: (i, 0)),
        compiler_params=pltpu.CompilerParams(dimension_semantics=("parallel",)),
    )(xp, wsrep, b1rep, wnd, w2st, b2k, gamma, beta)
    return out[:N]


# ----------------------------------------------------------------------------
# AtomNet_MP forward (glue: top-k selection and gathers are plain JAX)
# ----------------------------------------------------------------------------
def atomnet_mp_forward(params, xyz, atom_xyz, atomtypes, batch, batch_atom,
                       xyz_=None, batch_=None, atom_restypes=None):
    Na = atomtypes.shape[0]
    D = params["tt"]["W2"].shape[1]

    # self.transform_types(atomtypes) (+ res_embed lookup, fused)
    if atom_restypes is None:
        restypes = jnp.zeros((Na,), jnp.int32)
        res_table = jnp.zeros((MAX_AA_TYPES, D), jnp.float32)
    else:
        restypes = atom_restypes
        res_table = params["res_embed"]
    atom_feat = pallas_transform_types(atomtypes, restypes, res_table, params["tt"])

    # ---- Atom_Atom_embedding_MP: k=17 neighbors, drop self (col 0) ----
    # TODO(synk): streaming in-kernel top-k to avoid materializing d_aa in HBM.
    d_aa = pallas_pairwise_dist(atom_xyz, atom_xyz, batch_atom, batch_atom)
    negv, idx = jax.lax.top_k(-d_aa, 17)        # k smallest distances
    idx, dists = idx[:, 1:], -negv[:, 1:]       # drop the point itself
    out = atom_feat
    for layer in params["atom_atom"]:
        nbr = out[idx]                          # (Na, 16, D) XLA gather
        out = pallas_mp_layer(out, nbr, dists, layer)
    atom_feat = out

    # ---- Atom_embedding_MP: k=16 neighbors of each surface point ----
    def embed_points(x, xb):
        d = pallas_pairwise_dist(x, atom_xyz, xb, batch_atom)
        nv, nidx = jax.lax.top_k(-d, 16)
        ndists = -nv
        nbr = atom_feat[nidx]                   # (N, 16, D) constant over layers
        return pallas_embed_fused(nbr, ndists, params["embed"])

    point_feat = embed_points(xyz, batch)
    point_feat_ = embed_points(xyz_, batch_) if xyz_ is not None else None
    return point_feat, point_feat_


# ----------------------------------------------------------------------------
# Deterministic parameter init (shapes from the torch __init__)
# ----------------------------------------------------------------------------
def init_params(key, D=ATOM_DIMS):
    keys = iter(jax.random.split(key, 64))

    def lin(din, dout):
        w = jax.random.normal(next(keys), (din, dout), jnp.float32) / jnp.sqrt(din)
        b = 0.1 * jax.random.normal(next(keys), (dout,), jnp.float32)
        return w, b

    H = 2 * D + 1
    tt_w1, tt_b1 = lin(6, D)
    tt_w2, tt_b2 = lin(D, D)

    def mp_layer_params():
        w1, b1 = lin(H, H)
        w2, b2 = lin(H, D)
        gamma = 1.0 + 0.1 * jax.random.normal(next(keys), (D,), jnp.float32)
        beta = 0.1 * jax.random.normal(next(keys), (D,), jnp.float32)
        return {"W1": w1, "b1": b1, "W2": w2, "b2": b2, "gamma": gamma, "beta": beta}

    return {
        "tt": {"W1": tt_w1, "b1": tt_b1, "W2": tt_w2, "b2": tt_b2},
        "res_embed": 0.2 * jax.random.normal(next(keys), (MAX_AA_TYPES, D), jnp.float32),
        "atom_atom": [mp_layer_params() for _ in range(3)],
        "embed": [mp_layer_params() for _ in range(3)],
    }


# ----------------------------------------------------------------------------
# Pure-JAX reference (literal translation of the torch forward) for checking
# ----------------------------------------------------------------------------
def ref_forward(params, xyz, atom_xyz, atomtypes, batch, batch_atom,
                xyz_, batch_, atom_restypes):
    lrelu = lambda v: jnp.where(v >= 0, v, NEG_SLOPE * v)

    def gnorm(m, gamma, beta):
        N, D = m.shape
        g = m.reshape(N, 2, D // 2)
        mu = g.mean(-1, keepdims=True)
        var = ((g - mu) ** 2).mean(-1, keepdims=True)
        return ((g - mu) / jnp.sqrt(var + GN_EPS)).reshape(N, D) * gamma + beta

    def knn(x, y, xb, yb, k):
        d = ((x[:, None, :] - y[None, :, :]) ** 2).sum(-1)
        d = d + jnp.where(xb[:, None] != yb[None, :], BIG_DIST, 0.0)
        nv, idx = jax.lax.top_k(-d, k)
        return idx, -nv

    def mp(self_feat, nbr, dists, lp):
        feats = jnp.concatenate(
            [jnp.broadcast_to(self_feat[:, None, :], nbr.shape), nbr,
             dists[..., None]], axis=-1)
        h = lrelu(feats @ lp["W1"] + lp["b1"])
        msg = (h @ lp["W2"] + lp["b2"]).sum(1)
        return self_feat + lrelu(gnorm(msg, lp["gamma"], lp["beta"]))

    tt = params["tt"]
    atom_feat = lrelu(atomtypes @ tt["W1"] + tt["b1"]) @ tt["W2"] + tt["b2"]
    if atom_restypes is not None:
        atom_feat = atom_feat + params["res_embed"][atom_restypes]

    idx, dists = knn(atom_xyz, atom_xyz, batch_atom, batch_atom, 17)
    idx, dists = idx[:, 1:], dists[:, 1:]
    out = atom_feat
    for lp in params["atom_atom"]:
        out = mp(out, out[idx], dists, lp)
    atom_feat = out

    def embed(x, xb):
        nidx, ndists = knn(x, atom_xyz, xb, batch_atom, 16)
        nbr = atom_feat[nidx]
        pe = jnp.ones((x.shape[0], atom_feat.shape[1]), jnp.float32)
        for lp in params["embed"]:
            pe = mp(pe, nbr, ndists, lp)
        return pe

    return embed(xyz, batch), (embed(xyz_, batch_) if xyz_ is not None else None)


# ----------------------------------------------------------------------------
if __name__ == "__main__":
    key = jax.random.PRNGKey(0)
    kp, k1, k2, k3, k4, k5 = jax.random.split(key, 6)

    params = init_params(kp, ATOM_DIMS)

    n_atoms, n_pts, n_pts2 = 80, 64, 48          # 2 batch elements
    atom_xyz = 3.0 * jax.random.normal(k1, (n_atoms, 3), jnp.float32)
    xyz = 3.0 * jax.random.normal(k2, (n_pts, 3), jnp.float32)
    xyz_ = 3.0 * jax.random.normal(k3, (n_pts2, 3), jnp.float32)
    atomtypes = jax.random.normal(k4, (n_atoms, 6), jnp.float32)
    atom_restypes = jax.random.randint(k5, (n_atoms,), 0, MAX_AA_TYPES, jnp.int32)
    batch_atom = jnp.concatenate([jnp.zeros(40, jnp.int32), jnp.ones(40, jnp.int32)])
    batch = jnp.concatenate([jnp.zeros(32, jnp.int32), jnp.ones(32, jnp.int32)])
    batch_ = jnp.concatenate([jnp.zeros(24, jnp.int32), jnp.ones(24, jnp.int32)])

    point_feat, point_feat_ = atomnet_mp_forward(
        params, xyz, atom_xyz, atomtypes, batch, batch_atom,
        xyz_=xyz_, batch_=batch_, atom_restypes=atom_restypes)
    jax.block_until_ready((point_feat, point_feat_))

    # correctness check against a pure-JAX reference of the torch semantics
    ref_pf, ref_pf_ = ref_forward(
        params, xyz, atom_xyz, atomtypes, batch, batch_atom,
        xyz_, batch_, atom_restypes)
    assert point_feat.shape == (n_pts, ATOM_DIMS)
    assert point_feat_.shape == (n_pts2, ATOM_DIMS)
    assert jnp.allclose(point_feat, ref_pf, rtol=1e-3, atol=2e-3), \
        float(jnp.max(jnp.abs(point_feat - ref_pf)))
    assert jnp.allclose(point_feat_, ref_pf_, rtol=1e-3, atol=2e-3), \
        float(jnp.max(jnp.abs(point_feat_ - ref_pf_)))

    print("KERNEL_OK")
</pallas_src>

<mosaic_0001>
module attributes {stable_mosaic.version = 11 : i64} {
  func.func @mlp2_res_kernel(%arg0: i32, %arg1: memref<40x6xf32, #tpu.memory_space<vmem>>, %arg2: memref<40x1xi32, #tpu.memory_space<vmem>>, %arg3: memref<22x8xf32, #tpu.memory_space<vmem>>, %arg4: memref<6x8xf32, #tpu.memory_space<vmem>>, %arg5: memref<1x8xf32, #tpu.memory_space<vmem>>, %arg6: memref<8x8xf32, #tpu.memory_space<vmem>>, %arg7: memref<1x8xf32, #tpu.memory_space<vmem>>, %arg8: memref<40x8xf32, #tpu.memory_space<vmem>>) attributes {dimension_semantics = [#tpu.dimension_semantics<parallel>], iteration_bounds = array<i64: 2>, scalar_prefetch = 0 : i64, scratch_operands = 0 : i64, tpu.core_type = #tpu.core_type<tc>, window_params = [{transform_indices = @transform_0, window_bounds = array<i64: 40, 6>}, {transform_indices = @transform_1, window_bounds = array<i64: 40, 1>}, {pipeline_mode = #tpu.pipeline_mode<synchronous>, transform_indices = @transform_2, window_bounds = array<i64: 22, 8>}, {pipeline_mode = #tpu.pipeline_mode<synchronous>, transform_indices = @transform_3, window_bounds = array<i64: 6, 8>}, {pipeline_mode = #tpu.pipeline_mode<synchronous>, transform_indices = @transform_4, window_bounds = array<i64: 1, 8>}, {pipeline_mode = #tpu.pipeline_mode<synchronous>, transform_indices = @transform_5, window_bounds = array<i64: 8, 8>}, {pipeline_mode = #tpu.pipeline_mode<synchronous>, transform_indices = @transform_6, window_bounds = array<i64: 1, 8>}, {transform_indices = @transform_7, window_bounds = array<i64: 40, 8>}]} {
    %c0 = arith.constant 0 : index
    %c0_0 = arith.constant 0 : index
    %0 = vector.load %arg1[%c0, %c0_0] : memref<40x6xf32, #tpu.memory_space<vmem>>, vector<40x6xf32>
    %c0_1 = arith.constant 0 : index
    %c0_2 = arith.constant 0 : index
    %1 = vector.load %arg4[%c0_1, %c0_2] : memref<6x8xf32, #tpu.memory_space<vmem>>, vector<6x8xf32>
    %cst = arith.constant dense<0.000000e+00> : vector<40x8xf32>
    %2 = tpu.matmul %0, %1, %cst {dimension_numbers = #tpu.dot_dimension_numbers<[1], [0], [0], [1], [0, 0, 1, 1], [], []>} : vector<40x6xf32>, vector<6x8xf32>, vector<40x8xf32> -> vector<40x8xf32>
    %c0_3 = arith.constant 0 : index
    %c0_4 = arith.constant 0 : index
    %3 = vector.load %arg5[%c0_3, %c0_4] : memref<1x8xf32, #tpu.memory_space<vmem>>, vector<1x8xf32>
    %4 = vector.broadcast %3 : vector<1x8xf32> to vector<40x8xf32>
    %5 = arith.addf %2, %4 : vector<40x8xf32>
    %cst_5 = arith.constant 0.000000e+00 : f32
    %6 = vector.broadcast %cst_5 : f32 to vector<40x8xf32>
    %7 = arith.cmpf oge, %5, %6 : vector<40x8xf32>
    %cst_6 = arith.constant 2.000000e-01 : f32
    %8 = vector.broadcast %cst_6 : f32 to vector<40x8xf32>
    %9 = arith.mulf %8, %5 : vector<40x8xf32>
    %10 = arith.select %7, %5, %9 : vector<40x8xi1>, vector<40x8xf32>
    %c0_7 = arith.constant 0 : index
    %c0_8 = arith.constant 0 : index
    %11 = vector.load %arg6[%c0_7, %c0_8] : memref<8x8xf32, #tpu.memory_space<vmem>>, vector<8x8xf32>
    %cst_9 = arith.constant dense<0.000000e+00> : vector<40x8xf32>
    %12 = tpu.matmul %10, %11, %cst_9 {dimension_numbers = #tpu.dot_dimension_numbers<[1], [0], [0], [1], [0, 0, 1, 1], [], []>} : vector<40x8xf32>, vector<8x8xf32>, vector<40x8xf32> -> vector<40x8xf32>
    %c0_10 = arith.constant 0 : index
    %c0_11 = arith.constant 0 : index
    %13 = vector.load %arg7[%c0_10, %c0_11] : memref<1x8xf32, #tpu.memory_space<vmem>>, vector<1x8xf32>
    %14 = vector.broadcast %13 : vector<1x8xf32> to vector<40x8xf32>
    %15 = arith.addf %12, %14 : vector<40x8xf32>
    %c0_12 = arith.constant 0 : index
    %c0_13 = arith.constant 0 : index
    %16 = vector.load %arg2[%c0_12, %c0_13] : memref<40x1xi32, #tpu.memory_space<vmem>>, vector<40x1xi32>
    %17 = tpu.iota {dimensions = array<i32: 1>} : vector<1x22xi32>
    %18 = vector.broadcast %16 : vector<40x1xi32> to vector<40x22xi32>
    %19 = vector.broadcast %17 : vector<1x22xi32> to vector<40x22xi32>
    %20 = arith.cmpi eq, %18, %19 : vector<40x22xi32>
    %21 = arith.extui %20 : vector<40x22xi1> to vector<40x22xi32>
    %22 = arith.sitofp %21 : vector<40x22xi32> to vector<40x22xf32>
    %c0_14 = arith.constant 0 : index
    %c0_15 = arith.constant 0 : index
    %23 = vector.load %arg3[%c0_14, %c0_15] : memref<22x8xf32, #tpu.memory_space<vmem>>, vector<22x8xf32>
    %cst_16 = arith.constant dense<0.000000e+00> : vector<40x8xf32>
    %24 = tpu.matmul %22, %23, %cst_16 {dimension_numbers = #tpu.dot_dimension_numbers<[1], [0], [0], [1], [0, 0, 1, 1], [], []>} : vector<40x22xf32>, vector<22x8xf32>, vector<40x8xf32> -> vector<40x8xf32>
    %25 = arith.addf %15, %24 : vector<40x8xf32>
    %c0_17 = arith.constant 0 : index
    %c0_18 = arith.constant 0 : index
    %26 = vector.load %arg8[%c0_17, %c0_18] : memref<40x8xf32, #tpu.memory_space<vmem>>, vector<40x8xf32>
    tpu.vector_store %arg8[%c0_17, %c0_18], %25 {strides = array<i32>} : memref<40x8xf32, #tpu.memory_space<vmem>>, vector<40x8xf32>,
    return
  }
  func.func @transform_0(%arg0: i32) -> (i32, i32) {
    %c0_i32 = arith.constant 0 : i32
    %c0_i32_0 = arith.constant 0 : i32
    return %arg0, %c0_i32 : i32, i32
  }
  func.func @transform_1(%arg0: i32) -> (i32, i32) {
    %c0_i32 = arith.constant 0 : i32
    %c0_i32_0 = arith.constant 0 : i32
    return %arg0, %c0_i32 : i32, i32
  }
  func.func @transform_2(%arg0: i32) -> (i32, i32) {
    %c0_i32 = arith.constant 0 : i32
    %c0_i32_0 = arith.constant 0 : i32
    %c0_i32_1 = arith.constant 0 : i32
    return %c0_i32, %c0_i32_0 : i32, i32
  }
  func.func @transform_3(%arg0: i32) -> (i32, i32) {
    %c0_i32 = arith.constant 0 : i32
    %c0_i32_0 = arith.constant 0 : i32
    %c0_i32_1 = arith.constant 0 : i32
    return %c0_i32, %c0_i32_0 : i32, i32
  }
  func.func @transform_4(%arg0: i32) -> (i32, i32) {
    %c0_i32 = arith.constant 0 : i32
    %c0_i32_0 = arith.constant 0 : i32
    %c0_i32_1 = arith.constant 0 : i32
    return %c0_i32, %c0_i32_0 : i32, i32
  }
  func.func @transform_5(%arg0: i32) -> (i32, i32) {
    %c0_i32 = arith.constant 0 : i32
    %c0_i32_0 = arith.constant 0 : i32
    %c0_i32_1 = arith.constant 0 : i32
    return %c0_i32, %c0_i32_0 : i32, i32
  }
  func.func @transform_6(%arg0: i32) -> (i32, i32) {
    %c0_i32 = arith.constant 0 : i32
    %c0_i32_0 = arith.constant 0 : i32
    %c0_i32_1 = arith.constant 0 : i32
    return %c0_i32, %c0_i32_0 : i32, i32
  }
  func.func @transform_7(%arg0: i32) -> (i32, i32) {
    %c0_i32 = arith.constant 0 : i32
    %c0_i32_0 = arith.constant 0 : i32
    return %arg0, %c0_i32 : i32, i32
  }
}

</mosaic_0001>

<bundles_post_ra>
// kernel: tpu_custom_call.1
= control target key start
LH: loop header
LB: loop body
LE: loop exit
PB: predicated region body
PF: predicated region fallthrough
CT: control target
= control target key end

     0   :  { %s958_s24 = smov 0   ;;  %s1068_s0 = inlined_call_operand.vmem [shape: f32[80,6], index: 0, kind: input, shape index: {}]   ;;  %s1069_s1 = inlined_call_operand.vmem [shape: s32[80,1], index: 1, kind: input, shape index: {}]   ;;  %s1070_s2 = inlined_call_operand.vmem [shape: f32[22,8], index: 2, kind: input, shape index: {}]   ;;  %s1071_s3 = inlined_call_operand.vmem [shape: f32[6,8], index: 3, kind: input, shape index: {}]   ;;  %s1072_s4 = inlined_call_operand.vmem [shape: f32[1,8], index: 4, kind: input, shape index: {}]   ;;  %s1073_s5 = inlined_call_operand.vmem [shape: f32[8,8], index: 5, kind: input, shape index: {}]   ;;  %s1074_s6 = inlined_call_operand.vmem [shape: f32[1,8], index: 6, kind: input, shape index: {}]   ;;  %s1075_s7 = inlined_call_operand.vmem [shape: f32[80,8], index: 7, kind: output, shape index: {}]  }
   0x1 LB: > { %s783_s25 = sadd.s32 4294967295, %s913_s24   ;;  %p787_p0 = scmp.ge.s32.totalorder %s913_s24, 1  ;;  %s913_s24 = sphi %s958_s24, %s17_s24  }
   0x2   : > { %p249_p1 = scmp.lt.s32.totalorder %s913_s24, 3 }
   0x4   : > { %p250_p2 = pnand %p787_p0, %p249_p1 }
   0x5   : > { %s286_s28 = smul.u32 (!%p250_p2), 5, %s783_s25 }
   0x6   : > { %253 = sbr.rel (%p250_p2) target bundleno = 429 (0x1ad), region = 48 }
   0x7   : > { %p287_p3 = scmp.lt.s32.totalorder (!%p250_p2), %s286_s28, 9 }
   0xb   : > { %v309_v0 = vld [vmem:[%s1071_s3] sm:$0x3f]  ;;  %vm333_vm0 = vcmask 1045504   ;;  %v915_v1 = vmov 0.0   ;;  %vm916_vm1 = vmmov 0   ;;  %s1077_s28 = smov (!%p287_p3, %s286_s28), 9  ;;  %v561_v17 = vlaneseq }
   0xc   : > { %837 = vmatprep.subr.mxu0 %v915_v1  ;;  %839 = vmatprep.mubr.msk.f32.mxu0 %vm916_vm1, %v915_v1  ;;  %v917_v2 = vmov 0   ;;  %s979_s29 = sshll.u32 %s1077_s28, 3  ;;  %vm317_vm2 = vcmask 48128   ;;  %v595_v6 = vld [vmem:[%s1070_s2 + $0x10] sm:$0x3f]  ;;  %v594_v12 = vld [vmem:[%s1070_s2 + $0x8] sm:$0xff] }
   0xd   : > { %838 = vmatpush3.msk.msra.mxu0 %vm333_vm0, %v309_v0  ;;  %892 = vmatprep.subr.mxu1 %v915_v1  ;;  %s290_s9 = scalar_lea.vmem %s1068_s0, %s979_s29  ;;  %s296_s12 = scalar_lea.vmem %s1069_s1, %s979_s29  ;;  %v593_v14 = vld [vmem:[%s1070_s2] sm:$0xff]  ;;  %v562_v18 = vand.u32 127, %v561_v17  ;;  %vm596_vm3 = vcmask 179200   ;;  %vm450_vm10 = vcmask 64512  }
   0xe   : > { %893 = vmatpush3.msk.msra.mxu1 %vm333_vm0, %v309_v0  ;;  %845 = vmatprep.mubr.msk.f32.mxu1 %vm916_vm1, %v915_v1  ;;  %v304_v3 = vld [vmem:[%s290_s9] sm:$0xff]  ;;  %v306_v4 = vld [vmem:[%s290_s9 + $0x10] sm:$0xff]  ;;  %v305_v7 = vld [vmem:[%s290_s9 + $0x8] sm:$0xff]  ;;  %s302_s28 = scalar_lea.vmem %s1075_s7, %s979_s29 }
   0xf   : > { %905 = vset.pattern.permute.xlu0 %v917_v2  ;;  %906 = vset.pattern.permute.xlu1 %v917_v2  ;;  %v556_v5 = vld [vmem:[%s296_s12] sm:$0xff]  ;;  %v307_v8 = vld [vmem:[%s290_s9 + $0x18] sm:$0xff]  ;;  %v558_v9 = vld [vmem:[%s296_s12 + $0x10] sm:$0xff] }
  0x10   : > { %871 = vmatprep.subr.mxu0 %v915_v1  ;;  %854 = vmatprep.subr.mxu1 %v915_v1  ;;  %v557_v10 = vld [vmem:[%s296_s12 + $0x8] sm:$0xff]  ;;  %v559_v11 = vld [vmem:[%s296_s12 + $0x18] sm:$0xff]  ;;  %v308_v13 = vld [vmem:[%s290_s9 + $0x20] sm:$0xff] }
  0x11   : > { %840 = vmatmul.mubr.msk.f32.vlgmr.msra.gmra.mxu0 %vm317_vm2, %v304_v3  ;;  %846 = vmatmul.mubr.msk.f32.vlgmr.msra.gmra.mxu1 %vm317_vm2, %v306_v4  ;;  %v442_v15 = vld [vmem:[%s1073_s5] sm:$0xff] }
  0x12   : > { %842 = vmatprep.mubr.msk.f32.mxu0 %vm916_vm1, %v915_v1  ;;  %848 = vmatprep.mubr.msk.f32.mxu1 %vm916_vm1, %v915_v1  ;;  %v560_v16 = vld [vmem:[%s296_s12 + $0x20] sm:$0xff] }
  0x13   : > { %564 = vperm.xlu0 %905, %v556_v5   ;;  %570 = vperm.xlu1 %906, %v558_v9   ;;  %v791_v29 = vld [vmem:[%s1072_s4] ss:$0 sm:$0xff] }
  0x14   : > { %872 = vmatpush3.msk.msra.mxu0 %vm333_vm0, %v595_v6  ;;  %855 = vmatpush3.msra.mxu1 %v442_v15  ;;  %v798_v2 = vld [vmem:[%s1074_s6] ss:$0 sm:$0xff] }
  0x15   : > { %843 = vmatmul.mubr.msk.f32.gmra.mxu0 %vm317_vm2, %v305_v7  ;;  %849 = vmatmul.mubr.msk.f32.gmra.mxu1 %vm317_vm2, %v307_v8 }
  0x16   : > { %851 = vmatprep.mubr.msk.f32.mxu1 %vm916_vm1, %v915_v1  ;;  %873 = vmatprep.subr.mxu0 %v915_v1 }
  0x17   : > { %567 = vperm.xlu0 %905, %v557_v10   ;;  %573 = vperm.xlu1 %906, %v559_v11  }
  0x18   : > { %874 = vmatpush3.msra.mxu0 %v594_v12  ;;  %877 = vmatprep.mubr.msk.f32.mxu0 %vm916_vm1, %v915_v1 }
  0x19   : > { %852 = vmatmul.mubr.msk.f32.gmra.mxu1 %vm317_vm2, %v308_v13  ;;  %875 = vmatprep.subr.mxu0 %v915_v1 }
  0x1a   : > { %876 = vmatpush3.msra.mxu0 %v593_v14  ;;  %856 = vmatprep.mubr.msk.f32.mxu1 %vm916_vm1, %v915_v1 }
  0x1b   : > { %576 = vperm.xlu0 %905, %v560_v16  }
  0x8e   : > { %v565_v19 = vpop.permute.xlu0 %564  ;;  %v571_v20 = vpop.permute.xlu1 %570 }
  0x8f   : > { %vm578_vm4 = vcmp.eq.s32.totalorder %v565_v19, %v562_v18  ;;  %vm580_vm6 = vcmp.eq.s32.totalorder %v571_v20, %v562_v18 }
  0x90   : > { %v804_v21 = vsel %vm578_vm4, 1.0, %v915_v1  ;;  %v806_v25 = vsel %vm580_vm6, 1.0, %v915_v1 }
  0x91   : > { %878 = vmatmul.mubr.msk.f32.vlgmr.msra.gmra.mxu0 %vm596_vm3, %v804_v21 }
  0x92   : > { %v568_v22 = vpop.permute.xlu0 %567  ;;  %880 = vmatprep.mubr.msk.f32.mxu0 %vm916_vm1, %v915_v1  ;;  %v574_v24 = vpop.permute.xlu1 %573 }
  0x93   : > { %vm579_vm5 = vcmp.eq.s32.totalorder %v568_v22, %v562_v18  ;;  %vm581_vm7 = vcmp.eq.s32.totalorder %v574_v24, %v562_v18 }
  0x94   : > { %v805_v23 = vsel %vm579_vm5, 1.0, %v915_v1  ;;  %v807_v27 = vsel %vm581_vm7, 1.0, %v915_v1 }
  0x95   : > { %881 = vmatmul.mubr.msk.f32.gmra.mxu0 %vm596_vm3, %v805_v23 }
  0x96   : > { %883 = vmatprep.mubr.msk.f32.mxu0 %vm916_vm1, %v915_v1  ;;  %v577_v26 = vpop.permute.xlu0 %576 }
  0x97   : > { %vm582_vm8 = vcmp.eq.s32.totalorder %v577_v26, %v562_v18 }
  0x98   : > { %v808_v28 = vsel %vm582_vm8, 1.0, %v915_v1 }
  0x99   : > { %884 = vmatmul.mubr.msk.f32.gmra.mxu0 %vm596_vm3, %v806_v25 }
  0x9a   : > { %886 = vmatprep.mubr.msk.f32.mxu0 %vm916_vm1, %v915_v1 }
  0x9d   : > { %887 = vmatmul.mubr.msk.f32.gmra.mxu0 %vm596_vm3, %v807_v27 }
  0x9e   : > { %889 = vmatprep.mubr.msk.f32.mxu0 %vm916_vm1, %v915_v1 }
  0xa1   : > { %890 = vmatmul.mubr.msk.f32.gmra.mxu0 %vm596_vm3, %v808_v28 }
  0xd1   : > { %v403_v30 = vpop.f32.mrf.mxu0  ;;  %v413_v31 = vpop.f32.mrf.mxu1 }
  0xd2   : > { %v404_v32 = vadd.f32 %v791_v29, %v403_v30  ;;  %v414_v40 = vadd.f32 %v791_v29, %v413_v31 }
  0xd3   : > { %v841_v33 = vpop.f32.mrf.mxu0  ;;  %v847_v34 = vpop.f32.mrf.mxu1 }
  0xd4   : > { %vm427_vm9 = vcmp.ge.f32.partialorder %v404_v32, 0.0  ;;  %v432_v35 = vmul.f32 0.2, %v404_v32  ;;  %v434_v45 = vmul.f32 0.2, %v414_v40  ;;  %vm429_vm12 = vcmp.ge.f32.partialorder %v414_v40, 0.0 }
  0xd5   : > { %v408_v36 = vpop.f32.mrf.mxu0  ;;  %v418_v37 = vpop.f32.mrf.mxu1 }
  0xd6   : > { %v437_v38 = vsel %vm427_vm9, %v404_v32, %v432_v35  ;;  %v409_v39 = vadd.f32 %v791_v29, %v408_v36  ;;  %v419_v46 = vadd.f32 %v791_v29, %v418_v37  ;;  %v439_v51 = vsel %vm429_vm12, %v414_v40, %v434_v45 }
  0xd7   : > { %v844_v41 = vpop.f32.mrf.mxu0  ;;  %857 = vmatmul.mubr.msk.f32.vlgmr.msra.gmra.mxu1 %vm450_vm10, %v437_v38  ;;  %v850_v42 = vpop.f32.mrf.mxu1 }
  0xd8   : > { %vm428_vm11 = vcmp.ge.f32.partialorder %v409_v39, 0.0  ;;  %v433_v43 = vmul.f32 0.2, %v409_v39  ;;  %859 = vmatprep.mubr.msk.f32.mxu1 %vm916_vm1, %v915_v1  ;;  %v435_v49 = vmul.f32 0.2, %v419_v46  ;;  %vm430_vm13 = vcmp.ge.f32.partialorder %v419_v46, 0.0 }
  0xd9   : > { %v423_v44 = vpop.f32.mrf.mxu1 }
  0xda   : > { %v438_v47 = vsel %vm428_vm11, %v409_v39, %v433_v43  ;;  %v424_v50 = vadd.f32 %v791_v29, %v423_v44  ;;  %v440_v53 = vsel %vm430_vm13, %v419_v46, %v435_v49 }
  0xdb   : > { %860 = vmatmul.mubr.msk.f32.gmra.mxu1 %vm450_vm10, %v438_v47  ;;  %v853_v48 = vpop.f32.mrf.mxu1 }
  0xdc   : > { %862 = vmatprep.mubr.msk.f32.mxu1 %vm916_vm1, %v915_v1  ;;  %v436_v52 = vmul.f32 0.2, %v424_v50  ;;  %vm431_vm14 = vcmp.ge.f32.partialorder %v424_v50, 0.0 }
  0xde   : > { %v441_v54 = vsel %vm431_vm14, %v424_v50, %v436_v52 }
  0xdf   : > { %863 = vmatmul.mubr.msk.f32.gmra.mxu1 %vm450_vm10, %v439_v51 }
  0xe0   : > { %865 = vmatprep.mubr.msk.f32.mxu1 %vm916_vm1, %v915_v1 }
  0xe3   : > { %866 = vmatmul.mubr.msk.f32.gmra.mxu1 %vm450_vm10, %v440_v53 }
  0xe4   : > { %868 = vmatprep.mubr.msk.f32.mxu1 %vm916_vm1, %v915_v1 }
  0xe7   : > { %869 = vmatmul.mubr.msk.f32.gmra.mxu1 %vm450_vm10, %v441_v54 }
 0x151   : > { %v681_v55 = vpop.f32.mrf.mxu0 }
 0x153   : > { %v879_v56 = vpop.f32.mrf.mxu0 }
 0x155   : > { %v686_v57 = vpop.f32.mrf.mxu0 }
 0x157   : > { %v882_v58 = vpop.f32.mrf.mxu0 }
 0x159   : > { %v691_v59 = vpop.f32.mrf.mxu0 }
 0x15b   : > { %v885_v60 = vpop.f32.mrf.mxu0 }
 0x15d   : > { %v696_v61 = vpop.f32.mrf.mxu0 }
 0x15f   : > { %v888_v62 = vpop.f32.mrf.mxu0 }
 0x161   : > { %v701_v63 = vpop.f32.mrf.mxu0 }
 0x163   : > { %v891_v0 = vpop.f32.mrf.mxu0 }
 0x197   : > { %v532_v3 = vpop.f32.mrf.mxu1 }
 0x198   : > { %v533_v1 = vadd.f32 %v798_v2, %v532_v3 }
 0x199   : > { %v858_v4 = vpop.f32.mrf.mxu1 }
 0x19a   : > { %v705_v5 = vadd.f32 %v681_v55, %v533_v1 }
 0x19b   : > { %v537_v6 = vpop.f32.mrf.mxu1 }
 0x19c   : > { %710 = vst.msk [vmem:[%s302_s28] sm:$0xff] %vm450_vm10, %v705_v5  ;;  %v538_v7 = vadd.f32 %v798_v2, %v537_v6 }
 0x19d   : > { %v861_v8 = vpop.f32.mrf.mxu1 }
 0x19e   : > { %v706_v9 = vadd.f32 %v686_v57, %v538_v7 }
 0x19f   : > { %v542_v10 = vpop.f32.mrf.mxu1 }
 0x1a0   : > { %711 = vst.msk [vmem:[%s302_s28 + $0x8] sm:$0xff] %vm450_vm10, %v706_v9  ;;  %v543_v11 = vadd.f32 %v798_v2, %v542_v10 }
 0x1a1   : > { %v864_v12 = vpop.f32.mrf.mxu1 }
 0x1a2   : > { %v707_v13 = vadd.f32 %v691_v59, %v543_v11 }
 0x1a3   : > { %v547_v14 = vpop.f32.mrf.mxu1 }
 0x1a4   : > { %712 = vst.msk [vmem:[%s302_s28 + $0x10] sm:$0xff] %vm450_vm10, %v707_v13  ;;  %v548_v15 = vadd.f32 %v798_v2, %v547_v14 }
 0x1a5   : > { %v867_v16 = vpop.f32.mrf.mxu1 }
 0x1a6   : > { %v708_v17 = vadd.f32 %v696_v61, %v548_v15 }
 0x1a7   : > { %v552_v18 = vpop.f32.mrf.mxu1 }
 0x1a8   : > { %713 = vst.msk [vmem:[%s302_s28 + $0x18] sm:$0xff] %vm450_vm10, %v708_v17  ;;  %v553_v19 = vadd.f32 %v798_v2, %v552_v18 }
 0x1a9   : > { %v870_v20 = vpop.f32.mrf.mxu1 }
 0x1aa   : > { %v709_v21 = vadd.f32 %v701_v63, %v553_v19 }
 0x1ac   : > { %714 = vst.msk [vmem:[%s302_s28 + $0x20] sm:$0xff] %vm450_vm10, %v709_v21 }
 0x1ad PF: > { %s17_s24 = sadd.s32 1, %s913_s24  }
 0x1ae   : > { %p14_p4 = scmp.ge.s32.totalorder %s17_s24, 4  }
 0x1b0   :  { %16 = sbr.rel (!%p14_p4) target bundleno = 1 (0x1), region = 81 }

</bundles_post_ra>
